<compile_context>
chip_gen: v6e
topology: v6e:2x2x1
jax: 0.10.0
libtpu: 0.0.40
codegen_flags: <defaults>
</compile_context>

<pallas_src>
import math

import jax
import jax.numpy as jnp
from jax.experimental import pallas as pl
from jax.experimental.pallas import tpu as pltpu

D_LATENT = 40  # fixed by the PyTorch module
_LOG_2PI = math.log(2.0 * math.pi)


def _round_up(x, m):
    return ((x + m - 1) // m) * m


def _q_kernel(phi_ref, eps_ref, z_ref, score_ref):
    # Slice the fused phi tile inside the kernel (no HBM pre-slicing in the wrapper).
    # TODO(synk): verify in a bundle dump that the lane-40 offset slice lowers to a
    # cheap lane rotate (vrot) rather than a materialized VMEM copy; if it copies,
    # do the 40-lane shift explicitly with pltpu.roll once per tile.
    mu = phi_ref[:, :D_LATENT]
    raw = phi_ref[:, D_LATENT:]
    eps = eps_ref[...]

    # Numerically stable softplus: log(1 + exp(x)) = max(x, 0) + log1p(exp(-|x|))
    sigma = jnp.maximum(raw, 0.0) + jnp.log1p(jnp.exp(-jnp.abs(raw)))

    # Reparameterized sample (rsample).
    z_ref[...] = mu + sigma * eps

    # Normal log_prob summed over the latent dim, with constants hoisted out of the
    # per-element expression:
    #   sum_d [-0.5*eps^2 - log(sigma)] - (D/2)*log(2*pi)
    # ((z - mu)/sigma == eps exactly on the rsample path -> no reciprocal needed.)
    row_sq = jnp.sum(eps * eps, axis=1)            # (tb,)  lane reduction (XLU)
    row_logsig = jnp.sum(jnp.log(sigma), axis=1)   # (tb,)
    scores = -0.5 * row_sq - row_logsig - (0.5 * D_LATENT) * _LOG_2PI

    # Lane-dense store: per-row scalars go out along the lane axis of a (1, tb)
    # block (unmasked vst), instead of a masked last-dim-1 column store.
    score_ref[0, :] = scores

    # TODO(synk): if a bundle dump shows EUP saturating (3 transcendentals/elem at
    # only 40/128 lane occupancy), switch to a D-major (D, tb) compute layout via
    # in-kernel XLU transposes; kept row-major here since HBM and EUP are near-balanced.


def q_forward(phi, eps, *, block_b=4096):
    """phi: (B, 2*D_LATENT) f32, eps: (B, D_LATENT) f32 -> (z (B, D), score (B,))."""
    B = phi.shape[0]
    assert phi.shape == (B, 2 * D_LATENT)
    assert eps.shape == (B, D_LATENT)

    # Batch tile: big enough to amortize the ~0.35 us per-step pipeline overhead,
    # small enough (<= 4096 rows => ~12 MiB double-buffered, lane-padded) to fit the
    # default scoped-VMEM limit on v5e/v6e/v7x without flags.  For small B, aim for
    # >= 2 grid steps so both v7x TensorCores get work on the "parallel" axis.
    tb = min(block_b, max(8, _round_up(pl.cdiv(B, 2), 8)))
    num_blocks = pl.cdiv(B, tb)
    grid = (num_blocks,)

    cost = pl.CostEstimate(
        flops=10 * B * D_LATENT,
        transcendentals=3 * B * D_LATENT,          # exp, log1p, log per element
        bytes_accessed=16 * B * D_LATENT + 4 * B,  # phi + eps reads, z + score writes
    )

    z, score2d = pl.pallas_call(
        _q_kernel,
        out_shape=(
            jax.ShapeDtypeStruct((B, D_LATENT), jnp.float32),
            jax.ShapeDtypeStruct((num_blocks, tb), jnp.float32),
        ),
        grid=grid,
        in_specs=[
            pl.BlockSpec((tb, 2 * D_LATENT), lambda i: (i, 0)),  # fused phi tile
            pl.BlockSpec((tb, D_LATENT), lambda i: (i, 0)),      # eps tile
        ],
        out_specs=(
            pl.BlockSpec((tb, D_LATENT), lambda i: (i, 0)),      # z tile
            pl.BlockSpec((1, tb), lambda i: (i, 0)),             # lane-dense score tile
        ),
        compiler_params=pltpu.CompilerParams(
            dimension_semantics=("parallel",),
        ),
        cost_estimate=cost,
    )(phi, eps)

    # Free layout plumbing: (num_blocks, tb) -> (B,). Padded tail entries (if any)
    # are sliced away here; their in-kernel values never touch valid rows because
    # all kernel math is per-row.
    score = score2d.reshape(-1)[:B]
    return z, score


def _reference(phi, eps):
    mu = phi[:, :D_LATENT]
    sigma = jax.nn.softplus(phi[:, D_LATENT:])
    z = mu + sigma * eps
    lp = -0.5 * ((z - mu) / sigma) ** 2 - jnp.log(sigma) - 0.5 * _LOG_2PI
    return z, lp.sum(axis=1)


if __name__ == "__main__":
    key = jax.random.PRNGKey(0)

    # --- Small single-block check (B = 8) ---
    B = 8
    k_phi, k_eps, key = jax.random.split(key, 3)
    phi = jax.random.normal(k_phi, (B, 2 * D_LATENT), dtype=jnp.float32)
    eps = jax.random.normal(k_eps, (B, D_LATENT), dtype=jnp.float32)

    z, score = q_forward(phi, eps)
    jax.block_until_ready((z, score))

    z_ref, score_ref = _reference(phi, eps)
    assert jnp.allclose(z, z_ref, atol=1e-5, rtol=1e-5)
    assert jnp.allclose(score, score_ref, atol=1e-4, rtol=1e-4)

    # --- Multi-block check (exercises grid > 1, tail padding, lane-dense score) ---
    B2 = 80
    k_phi2, k_eps2, key = jax.random.split(key, 3)
    phi2 = jax.random.normal(k_phi2, (B2, 2 * D_LATENT), dtype=jnp.float32)
    eps2 = jax.random.normal(k_eps2, (B2, D_LATENT), dtype=jnp.float32)

    z2, score2 = q_forward(phi2, eps2, block_b=32)  # tb=32 -> 3 grid steps, ragged tail
    jax.block_until_ready((z2, score2))

    z2_ref, score2_ref = _reference(phi2, eps2)
    assert jnp.allclose(z2, z2_ref, atol=1e-5, rtol=1e-5)
    assert jnp.allclose(score2, score2_ref, atol=1e-4, rtol=1e-4)

    print("KERNEL_OK")
</pallas_src>

<mosaic_0001>
module attributes {stable_mosaic.version = 11 : i64} {
  func.func @_q_kernel(%arg0: i32, %arg1: memref<8x80xf32, #tpu.memory_space<vmem>>, %arg2: memref<8x40xf32, #tpu.memory_space<vmem>>, %arg3: memref<8x40xf32, #tpu.memory_space<vmem>>, %arg4: memref<1x8xf32, #tpu.memory_space<vmem>>) attributes {dimension_semantics = [#tpu.dimension_semantics<parallel>], iteration_bounds = array<i64: 1>, scalar_prefetch = 0 : i64, scratch_operands = 0 : i64, tpu.core_type = #tpu.core_type<tc>, window_params = [{transform_indices = @transform_0, window_bounds = array<i64: 8, 80>}, {transform_indices = @transform_1, window_bounds = array<i64: 8, 40>}, {transform_indices = @transform_2, window_bounds = array<i64: 8, 40>}, {transform_indices = @transform_3, window_bounds = array<i64: 1, 8>}]} {
    %c0 = arith.constant 0 : index
    %c0_0 = arith.constant 0 : index
    %0 = vector.load %arg1[%c0, %c0_0] : memref<8x80xf32, #tpu.memory_space<vmem>>, vector<8x40xf32>
    %c0_1 = arith.constant 0 : index
    %c40 = arith.constant 40 : index
    %1 = vector.load %arg1[%c0_1, %c40] : memref<8x80xf32, #tpu.memory_space<vmem>>, vector<8x40xf32>
    %c0_2 = arith.constant 0 : index
    %c0_3 = arith.constant 0 : index
    %2 = vector.load %arg2[%c0_2, %c0_3] : memref<8x40xf32, #tpu.memory_space<vmem>>, vector<8x40xf32>
    %cst = arith.constant 0.000000e+00 : f32
    %3 = vector.broadcast %cst : f32 to vector<8x40xf32>
    %4 = arith.maximumf %1, %3 : vector<8x40xf32>
    %5 = math.absf %1 : vector<8x40xf32>
    %cst_4 = arith.constant 0.000000e+00 : f32
    %6 = vector.broadcast %cst_4 : f32 to vector<8x40xf32>
    %7 = arith.subf %6, %5 : vector<8x40xf32>
    %8 = math.exp %7 : vector<8x40xf32>
    %9 = math.log1p %8 : vector<8x40xf32>
    %10 = arith.addf %4, %9 : vector<8x40xf32>
    %11 = arith.mulf %10, %2 : vector<8x40xf32>
    %12 = arith.addf %0, %11 : vector<8x40xf32>
    %c0_5 = arith.constant 0 : index
    %c0_6 = arith.constant 0 : index
    %13 = vector.load %arg3[%c0_5, %c0_6] : memref<8x40xf32, #tpu.memory_space<vmem>>, vector<8x40xf32>
    tpu.vector_store %arg3[%c0_5, %c0_6], %12 {strides = array<i32>} : memref<8x40xf32, #tpu.memory_space<vmem>>, vector<8x40xf32>,
    %14 = arith.mulf %2, %2 : vector<8x40xf32>
    %cst_7 = arith.constant dense<0.000000e+00> : vector<8xf32>
    %15 = vector.multi_reduction <add>, %14, %cst_7 [1] : vector<8x40xf32> to vector<8xf32>
    %16 = math.log %10 : vector<8x40xf32>
    %cst_8 = arith.constant dense<0.000000e+00> : vector<8xf32>
    %17 = vector.multi_reduction <add>, %16, %cst_8 [1] : vector<8x40xf32> to vector<8xf32>
    %cst_9 = arith.constant -5.000000e-01 : f32
    %18 = vector.broadcast %cst_9 : f32 to vector<8xf32>
    %19 = arith.mulf %18, %15 : vector<8xf32>
    %20 = arith.subf %19, %17 : vector<8xf32>
    %cst_10 = arith.constant 36.7575417 : f32
    %21 = vector.broadcast %cst_10 : f32 to vector<8xf32>
    %22 = arith.subf %20, %21 : vector<8xf32>
    %c0_11 = arith.constant 0 : index
    %c0_12 = arith.constant 0 : index
    %23 = vector.load %arg4[%c0_11, %c0_12] : memref<1x8xf32, #tpu.memory_space<vmem>>, vector<1x8xf32>
    %24 = vector.shape_cast %23 : vector<1x8xf32> to vector<8xf32>
    %25 = vector.shape_cast %22 : vector<8xf32> to vector<1x8xf32>
    tpu.vector_store %arg4[%c0_11, %c0_12], %25 {strides = array<i32>} : memref<1x8xf32, #tpu.memory_space<vmem>>, vector<1x8xf32>,
    return
  }
  func.func @transform_0(%arg0: i32) -> (i32, i32) {
    %c0_i32 = arith.constant 0 : i32
    %c0_i32_0 = arith.constant 0 : i32
    return %arg0, %c0_i32 : i32, i32
  }
  func.func @transform_1(%arg0: i32) -> (i32, i32) {
    %c0_i32 = arith.constant 0 : i32
    %c0_i32_0 = arith.constant 0 : i32
    return %arg0, %c0_i32 : i32, i32
  }
  func.func @transform_2(%arg0: i32) -> (i32, i32) {
    %c0_i32 = arith.constant 0 : i32
    %c0_i32_0 = arith.constant 0 : i32
    return %arg0, %c0_i32 : i32, i32
  }
  func.func @transform_3(%arg0: i32) -> (i32, i32) {
    %c0_i32 = arith.constant 0 : i32
    %c0_i32_0 = arith.constant 0 : i32
    return %arg0, %c0_i32 : i32, i32
  }
}

</mosaic_0001>

<bundles_post_ra>
// kernel: tpu_custom_call.1
= control target key start
LH: loop header
LB: loop body
LE: loop exit
PB: predicated region body
PF: predicated region fallthrough
CT: control target
= control target key end

     0   :  { %9 = vsyncpa [#allocation3], 0  ;;  %s266_s0 = inlined_call_operand.hbm [shape: f32[8,80], index: 0, kind: input, shape index: {}]   ;;  %s267_s1 = inlined_call_operand.hbm [shape: f32[8,40], index: 1, kind: input, shape index: {}]   ;;  %s268_s2 = inlined_call_operand.hbm [shape: f32[8,40], index: 2, kind: output, shape index: {0}]   ;;  %s269_s3 = inlined_call_operand.hbm [shape: f32[1,8], index: 3, kind: output, shape index: {1}]  }
   0x1   :  { %10 = vsyncpa [#allocation6], 0 }
   0x2   :  { %11 = vsyncpa [#allocation4], 0 }
   0x3   :  { %12 = vsyncpa [#allocation9], 0  ;;  %s225_s12 = smov [#allocation2]   ;;  %s226_s14 = smov [#allocation5]  }
   0x4   :  { %s19_s13 = sshll.u32 %s225_s12, 4  ;;  %s29_s15 = sshll.u32 %s226_s14, 4  ;;  %s20_s13 = int_to_ptr.vmem [resolvable:$true] %s19_s13  ;;  %s30_s15 = int_to_ptr.vmem [resolvable:$true] %s29_s15 }
   0x5   :  { %s145_s16 = scalar_lea.vmem %s20_s13, 128  ;;  %p150_p1 = scmp.lt.s32.totalorder %s20_s13, %s20_s13 }
   0x6   :  { %p146_p0 = scmp.ne.s32.totalorder %s20_s13, %s145_s16  ;;  %p151_p2 = scmp.lt.s32.totalorder %s145_s16, %s145_s16 }
   0x8   :  { %p152_p3 = por %p151_p2, %p150_p1 }
   0xa   :  { %p153_p4 = pnand %p152_p3, %p146_p0 }
   0xc   :  { %156 = shalt.err (!%p153_p4)
}
   0xd   :  { %22 = dma.hbm_to_vmem [thread:$0]  %s266_s0, 128, %s20_s13, [#allocation3]  }
   0xe   :  { %s165_s19 = scalar_lea.vmem %s30_s15, 128  ;;  %p170_p6 = scmp.lt.s32.totalorder %s30_s15, %s30_s15 }
   0xf   :  { %p166_p5 = scmp.ne.s32.totalorder %s30_s15, %s165_s19  ;;  %p171_p7 = scmp.lt.s32.totalorder %s165_s19, %s165_s19 }
  0x11   :  { %p172_p8 = por %p171_p7, %p170_p6 }
  0x13   :  { %p173_p9 = pnand %p172_p8, %p166_p5 }
  0x15   :  { %176 = shalt.err (!%p173_p9)
}
  0x16   :  { %32 = dma.hbm_to_vmem [thread:$0]  %s267_s1, 128, %s30_s15, [#allocation6]  }
  0x17   :  { %217 = dma.done.wait [#allocation3], 128  }
  0x18   :  { %218 = vsyncadd [#allocation3], 4294967168 }
  0x19   :  { %219 = dma.done.wait [#allocation6], 128  }
  0x1a   :  { %220 = vsyncadd [#allocation6], 4294967168  ;;  %v39_v0 = vld [vmem:[#allocation2] sm:$0xff]  ;;  %v40_v1 = vld [vmem:[#allocation5] sm:$0xff]  ;;  %vm66_vm0 = vcmask 326656   ;;  %s227_s0 = smov 88  }
  0x1b   :  { %v42_v2 = vand.u32 2147483647, %v39_v0  ;;  %v68_v3 = vmul.f32 %v40_v1, %v40_v1  ;;  %v41_v14 = vmax.f32 %v39_v0, 0.0  ;;  %s228_s1 = smov 40   ;;  %s229_s22 = smov [#allocation7]  }
  0x1c   :  { %s100_s23 = sshll.u32 %s229_s22, 4  ;;  %s101_s23 = int_to_ptr.vmem [resolvable:$true] %s100_s23 }
  0x1d   :  { %v43_v4 = vsub.f32 0.0, %v42_v2  ;;  %v69_v5 = vsel %vm66_vm0, %v68_v3, 0.0  ;;  %s177_s24 = scalar_lea.vmem %s101_s23, 128  ;;  %p182_p11 = scmp.lt.s32.totalorder %s101_s23, %s101_s23 }
  0x1e   :  { %70 = vadd.xlane.f32.xlu1 %v69_v5  ;;  %p178_p10 = scmp.ne.s32.totalorder %s101_s23, %s177_s24  ;;  %p183_p12 = scmp.lt.s32.totalorder %s177_s24, %s177_s24 }
  0x1f   :  { %v44_v6 = vmul.f32 1.442695, %v43_v4 }
  0x20   :  { %p184_p13 = por %p183_p12, %p182_p11 }
  0x21   :  { %131 = vpow2.f32 %v44_v6 }
  0x22   :  { %p185_p0 = pnand %p184_p13, %p178_p10 }
  0x2e   :  { %v132_v7 = vpop.eup %131 }
  0x2f   :  { %v46_v8 = vadd.f32 1.0, %v132_v7  ;;  %v49_v9 = vmul.f32 -0.5, %v132_v7  ;;  %v52_v11 = vand.u32 2147483647, %v132_v7 }
  0x31   :  { %133 = vlog2.f32 %v46_v8  ;;  %v50_v10 = vadd.f32 1.0, %v49_v9  ;;  %vm53_vm1 = vcmp.lt.f32.partialorder %v52_v11, 0.0004427343 }
  0x33   :  { %v51_v12 = vmul.f32 %v132_v7, %v50_v10 }
  0x3e   :  { %v134_v13 = vpop.eup %133 }
  0x3f   :  { %v48_v15 = vmul.f32 0.6931472, %v134_v13 }
  0x41   :  { %v54_v16 = vsel %vm53_vm1, %v51_v12, %v48_v15 }
  0x42   :  { %v55_v17 = vadd.f32 %v54_v16, %v41_v14 }
  0x44   :  { %135 = vlog2.f32 %v55_v17 }
  0x51   :  { %v136_v18 = vpop.eup %135 }
  0x52   :  { %v73_v19 = vmul.f32 0.6931472, %v136_v18 }
  0x54   :  { %75 = vrot.lane.b32.xlu0 %v73_v19, %s227_s0 }
  0x58   :  { %57 = vrot.lane.b32.xlu0 %v40_v1, %s228_s1 }
  0xc6   :  { %v76_v20 = vpop.permute.xlu0 %75 }
  0xc7   :  { %v78_v21 = vsel %vm66_vm0, %v76_v20, 0.0 }
  0xc8   :  { %79 = vadd.xlane.f32.xlu1 %v78_v21 }
  0xca   :  { %v58_v22 = vpop.permute.xlu0 %57 }
  0xcb   :  { %v60_v23 = vmul.f32 %v58_v22, %v55_v17 }
  0xcd   :  { %62 = vrot.lane.b32.xlu0 %v60_v23, %s227_s0 }
 0x13f   :  { %v63_v24 = vpop.permute.xlu0 %62 }
 0x140   :  { %v65_v25 = vadd.f32 %v63_v24, %v39_v0 }
 0x142   :  { %67 = vst.msk [vmem:[#allocation7] sm:$0xff] %vm66_vm0, %v65_v25 }
 0x143   :  { %188 = shalt.err (!%p185_p0)
}
 0x144   :  { %103 = dma.vmem_to_hbm [thread:$0]  %s101_s23, 128, %s268_s2, [#allocation4]   ;;  %v85_v26 = vlaneseq  ;;  %v71_v27 = vpop.xlane.xlu1 %70  ;;  %vm92_vm2 = vcmask 57344  }
 0x145   :  { %v81_v30 = vmul.f32 -0.5, %v71_v27  ;;  %s230_s27 = smov [#allocation8]  }
 0x146   :  { %v86_v28 = vand.u32 127, %v85_v26  ;;  %v88_v29 = vshrl.u32 %v85_v26, 7  ;;  %s110_s28 = sshll.u32 %s230_s27, 4  ;;  %s111_s28 = int_to_ptr.vmem [resolvable:$true] %s110_s28 }
 0x147   :  { %s197_s29 = scalar_lea.vmem %s111_s28, 16  ;;  %s201_s30 = scalar_lea.vmem %s111_s28, 32 }
 0x148   :  { %v89_v32 = vsub.s32 %v86_v28, %v88_v29  ;;  %p198_p1 = scmp.ne.s32.totalorder %s111_s28, %s197_s29  ;;  %p202_p2 = scmp.lt.s32.totalorder %s111_s28, %s111_s28 }
 0x149   :  { %p203_p3 = scmp.lt.s32.totalorder %s201_s30, %s197_s29 }
 0x14b   :  { %p204_p4 = por %p203_p3, %p202_p2 }
 0x14d   :  { %p205_p5 = pnand %p204_p4, %p198_p1 }
 0x151   :  { %v80_v31 = vpop.xlane.xlu1 %79 }
 0x152   :  { %v82_v33 = vsub.f32 %v81_v30, %v80_v31 }
 0x154   :  { %v124_v34 = vadd.f32 -36.75754, %v82_v33 }
 0x156   :  { %v90_v35 = vrot.slane %v124_v34, %v89_v32 }
 0x158   :  { %93 = vst.msk [vmem:[#allocation8] sm:$0x1] %vm92_vm2, %v90_v35 }
 0x159   :  { %208 = shalt.err (!%p205_p5)
}
 0x15a   :  { %113 = dma.vmem_to_hbm [thread:$0]  %s111_s28, 16, %s269_s3, [#allocation9]  }
 0x15b   :  { %221 = dma.done.wait [#allocation4], 128  }
 0x15c   :  { %222 = vsyncadd [#allocation4], 4294967168 }
 0x15d   :  { %223 = dma.done.wait [#allocation9], 16  }
 0x15e   :  { %224 = vsyncadd [#allocation9], 4294967280 }
 0x15f   :  { %120 = vsyncpa [#allocation3], 1 }
 0x160   :  { %121 = vsyncpa [#allocation6], 1 }
 0x161   :  { %122 = vsyncpa [#allocation4], 1 }
 0x162   :  { %123 = vsyncpa [#allocation9], 1 }

</bundles_post_ra>
